<compile_context>
chip_gen: v6e
topology: v6e:2x2x1
jax: 0.10.0
libtpu: 0.0.40
codegen_flags: <defaults>
</compile_context>

<pallas_src>
import functools

import jax
import jax.numpy as jnp
from jax.experimental import pallas as pl
from jax.experimental.pallas import tpu as pltpu


# ----------------------------- shared helpers -----------------------------

def _round_up(x, m):
    return ((x + m - 1) // m) * m


def _layernorm(x, gamma, beta, eps=1e-6):
    # Elementwise math kept in f32 (v5e VPU/EUP have no bf16 support).
    mean = jnp.mean(x, axis=-1, keepdims=True)
    var = jnp.mean((x - mean) ** 2, axis=-1, keepdims=True)
    return (x - mean) * jax.lax.rsqrt(var + eps) * gamma + beta


def _vmem_limit_bytes():
    try:
        cap = int(pltpu.get_tpu_info().vmem_capacity_bytes)
    except Exception:
        cap = 64 << 20              # assume the most restrictive generation (v7x)
    return (cap * 3) // 4           # headroom for compiler-internal scratch


# ----------------------- tubelet embedding projection ----------------------

def _patch_embed_kernel(x_ref, w_ref, b_ref, o_ref):
    acc = jnp.dot(x_ref[...], w_ref[...], preferred_element_type=jnp.float32) + b_ref[...]
    o_ref[...] = acc.astype(o_ref.dtype)


def patch_embed_forward(patches, w, b, tm_max=512):
    """Tiled (over M) projection of extracted tubelets: (M, K) @ (K, D) + b -> bf16."""
    M, K = patches.shape
    D = w.shape[1]
    tm = min(tm_max, _round_up(M, 8))
    Mp = _round_up(M, tm)
    if Mp != M:
        patches = jnp.pad(patches, ((0, Mp - M), (0, 0)))
    out = pl.pallas_call(
        _patch_embed_kernel,
        out_shape=jax.ShapeDtypeStruct((Mp, D), jnp.bfloat16),
        grid=(Mp // tm,),
        in_specs=[
            pl.BlockSpec((tm, K), lambda i: (i, 0)),
            pl.BlockSpec((K, D), lambda i: (0, 0)),
            pl.BlockSpec((1, D), lambda i: (0, 0)),
        ],
        out_specs=pl.BlockSpec((tm, D), lambda i: (i, 0)),
        compiler_params=pltpu.CompilerParams(dimension_semantics=("parallel",)),
    )(patches.astype(jnp.bfloat16), w, b)
    return out[:M]


# ------------- fully fused encoder stack + final norm + classifier ---------

_WKEYS = ('ln1_g', 'ln1_b', 'wqkv', 'bqkv', 'wproj', 'bproj',
          'ln2_g', 'ln2_b', 'wfc1', 'bfc1', 'wfc2', 'bfc2')


def _encoder_kernel(n_heads,
                    tok_ref, init_ref,
                    ln1_g, ln1_b, wqkv, bqkv, wproj, bproj,
                    ln2_g, ln2_b, wfc1, bfc1, wfc2, bfc2,
                    ng_ref, nb_ref, hw_ref, hb_ref,
                    o_ref, xs_ref):
    """Grid = (batch_tiles, depth).  Residual stream carried across the layer
    ('arbitrary') axis in the xs_ref VMEM scratch; only the classifier logits are
    written to HBM (at the last layer)."""
    l = pl.program_id(1)
    n_layers = pl.num_programs(1)

    B, S_pad, D = xs_ref.shape
    P = tok_ref.shape[1]
    S = P + 1                              # real (unpadded) sequence length
    hd = D // n_heads
    Cp = o_ref.shape[2]

    # ---- layer-0 init: cls token + positional embedding fused in ----
    @pl.when(l == 0)
    def _():
        init = init_ref[...]               # (1, S_pad, D): [cls+pos0, pos1.., 0-padding]
        xs_ref[...] = jnp.broadcast_to(init, (B, S_pad, D))
        xs_ref[:, 1:1 + P, :] = tok_ref[...].astype(jnp.float32) + init[:, 1:1 + P, :]

    x = xs_ref[...]                        # (B, S_pad, D) f32
    xf = x.reshape(B * S_pad, D)           # MXU-shaped M dim (S_pad multiple of 8)

    # ---- multi-head self-attention (1/sqrt(hd) pre-folded into wqkv's Q columns) ----
    h = _layernorm(xf, ln1_g[0], ln1_b[0])
    qkv = jnp.dot(h.astype(jnp.bfloat16), wqkv[0],
                  preferred_element_type=jnp.float32) + bqkv[0]          # (B*S_pad, 3D)
    qkv = qkv.reshape(B, S_pad, 3 * D)

    # Heads folded into the einsum batch dim: one batched score/softmax/PV chain.
    # TODO(synk): replace the slice+stack with a single head->batch relayout
    # (pltpu.einshape / 4-D transpose) once that lowering is verified on target Mosaic.
    qs = [qkv[:, :, i * hd:(i + 1) * hd] for i in range(n_heads)]
    ks = [qkv[:, :, D + i * hd:D + (i + 1) * hd] for i in range(n_heads)]
    vs = [qkv[:, :, 2 * D + i * hd:2 * D + (i + 1) * hd] for i in range(n_heads)]
    q = jnp.stack(qs, axis=0).reshape(n_heads * B, S_pad, hd).astype(jnp.bfloat16)
    k = jnp.stack(ks, axis=0).reshape(n_heads * B, S_pad, hd).astype(jnp.bfloat16)
    v = jnp.stack(vs, axis=0).reshape(n_heads * B, S_pad, hd).astype(jnp.bfloat16)

    # TODO(synk): at production S (~3k) tile this over KV blocks (flash-style) instead of
    # materializing the full (n_heads*B, S, S) score tensor.
    s = jnp.einsum('bqd,bkd->bqk', q, k, preferred_element_type=jnp.float32)
    if S_pad != S:                          # mask sublane-padding key rows
        kidx = jax.lax.broadcasted_iota(jnp.int32, (1, 1, S_pad), 2)
        s = jnp.where(kidx < S, s, -1e30)
    # TODO(synk): softmax/GELU kept f32 for v5e compatibility; bf16 is faster on v6e/v7x.
    s = s - jnp.max(s, axis=-1, keepdims=True)
    p = jnp.exp(s)
    # TODO(synk): approximate reciprocal (EUP); use exact division for tight parity tests.
    p = p * pl.reciprocal(jnp.sum(p, axis=-1, keepdims=True), approx=True)

    o = jnp.einsum('bqk,bkd->bqd', p.astype(jnp.bfloat16), v,
                   preferred_element_type=jnp.float32)
    o = o.reshape(n_heads, B, S_pad, hd)
    attn = jnp.concatenate([o[i] for i in range(n_heads)], axis=-1).reshape(B * S_pad, D)
    attn = jnp.dot(attn.astype(jnp.bfloat16), wproj[0],
                   preferred_element_type=jnp.float32) + bproj[0]
    xf = xf + attn                          # residual; attn/proj dropout identity (eval)

    # ---- MLP ----
    h2 = _layernorm(xf, ln2_g[0], ln2_b[0])
    h2 = jnp.dot(h2.astype(jnp.bfloat16), wfc1[0],
                 preferred_element_type=jnp.float32) + bfc1[0]
    h2 = jax.nn.gelu(h2, approximate=True)  # TODO(synk): PyTorch nn.GELU() is exact erf
    h2 = jnp.dot(h2.astype(jnp.bfloat16), wfc2[0],
                 preferred_element_type=jnp.float32) + bfc2[0]
    xf = xf + h2                            # residual; dropout identity (eval)

    # ---- carry residual to next layer, or fused final-LN + classifier epilogue ----
    @pl.when(l < n_layers - 1)
    def _():
        xs_ref[...] = xf.reshape(B, S_pad, D)

    @pl.when(l == n_layers - 1)
    def _():
        x3 = xf.reshape(B, S_pad, D)
        for bb in range(B):                 # small static loop; only the CLS row is needed
            cls = x3[bb, 0:1, :]            # (1, D)
            hc = _layernorm(cls, ng_ref[...], nb_ref[...], eps=1e-6)
            logit = jnp.dot(hc.astype(jnp.bfloat16), hw_ref[...],
                            preferred_element_type=jnp.float32) + hb_ref[...]
            o_ref[bb:bb + 1, 0:1, :] = logit.reshape(1, 1, Cp)


def _encoder_tile_bytes(b, S_pad, P, D, n_heads, layer_bytes):
    """Rough upper bound on live VMEM bytes for one (b, S_pad, D) encoder tile."""
    f32, bf16 = 4, 2
    rows = b * S_pad
    byt = b * S_pad * D * f32                     # residual-stream scratch
    byt += rows * D * (2 * f32 + bf16)            # x / LN output / bf16 cast
    byt += rows * 3 * D * (f32 + bf16)            # qkv (f32) + head-batched q,k,v (bf16)
    byt += 2 * n_heads * b * S_pad * S_pad * f32  # scores + probabilities
    byt += rows * D * f32                         # attention output
    byt += 2 * rows * 4 * D * f32                 # MLP hidden (+ GELU temp)
    byt += 2 * b * P * D * bf16                   # resident token-input block
    byt += 2 * layer_bytes                        # double-buffered per-layer weights
    return byt


def _pick_b_tile(N, S_pad, P, D, n_heads, layer_bytes, budget):
    """Largest batch tile whose live bytes fit the per-generation VMEM budget, preferring
    >=2 batch grid steps so both v7x TensorCores get work (negligible cost elsewhere)."""
    fits = [d for d in range(1, N + 1)
            if N % d == 0
            and _encoder_tile_bytes(d, S_pad, P, D, n_heads, layer_bytes) <= budget]
    if not fits:
        # TODO(synk): at production S the SxS scores dominate even at b=1; needs
        # flash-style KV tiling rather than this fallback.
        return 1
    multi = [d for d in fits if N // d >= 2]
    return max(multi) if multi else max(fits)


def encoder_forward(tokens, init, blocks, norm_g, norm_b, head_w, head_b, n_heads):
    N, P, D = tokens.shape
    S_pad = init.shape[1]
    Cp = head_w.shape[1]
    depth = blocks['wqkv'].shape[0]

    vmem_limit = _vmem_limit_bytes()
    layer_bytes = sum(int(v.nbytes) // depth for v in blocks.values())
    b_tile = _pick_b_tile(N, S_pad, P, D, n_heads, layer_bytes,
                          budget=(vmem_limit * 3) // 5)

    def wspec(arr):                         # per-layer weight: select layer l
        nd = arr.ndim
        return pl.BlockSpec((1,) + arr.shape[1:],
                            lambda b, l, _n=nd: (l,) + (0,) * (_n - 1))

    def cspec(arr):                         # constant (resident) input
        nd = arr.ndim
        return pl.BlockSpec(arr.shape, lambda b, l, _n=nd: (0,) * _n)

    in_specs = [pl.BlockSpec((b_tile, P, D), lambda b, l: (b, 0, 0)), cspec(init)]
    in_specs += [wspec(blocks[kk]) for kk in _WKEYS]
    in_specs += [cspec(norm_g), cspec(norm_b), cspec(head_w), cspec(head_b)]

    out = pl.pallas_call(
        functools.partial(_encoder_kernel, n_heads),
        out_shape=jax.ShapeDtypeStruct((N, 1, Cp), jnp.float32),
        grid=(N // b_tile, depth),
        in_specs=in_specs,
        out_specs=pl.BlockSpec((b_tile, 1, Cp), lambda b, l: (b, 0, 0)),
        scratch_shapes=[pltpu.VMEM((b_tile, S_pad, D), jnp.float32)],
        compiler_params=pltpu.CompilerParams(
            dimension_semantics=("parallel", "arbitrary"),
            vmem_limit_bytes=int(vmem_limit)),
    )(tokens, init, *(blocks[kk] for kk in _WKEYS), norm_g, norm_b, head_w, head_b)
    return out[:, 0, :]                     # (N, Cp)


# ------------------------------ full forward --------------------------------

def tubelet_patches(x, p):
    # Conv3d with kernel_size == stride == p  ==  non-overlapping tubelet extraction.
    N, C, T, H, W = x.shape
    x = x.reshape(N, C, T // p, p, H // p, p, W // p, p)
    x = x.transpose(0, 2, 4, 6, 1, 3, 5, 7)          # (N, nT, nH, nW, C, p, p, p)
    return x.reshape(N, (T // p) * (H // p) * (W // p), C * p * p * p)


def vivit_forward(x, params, n_heads):
    N = x.shape[0]
    p = params['patch_size']
    patches = tubelet_patches(x, p)                  # (N, P, C*p^3)
    _, P, K = patches.shape
    D = params['patch_w'].shape[1]

    tokens = patch_embed_forward(patches.reshape(N * P, K),
                                 params['patch_w'], params['patch_b']).reshape(N, P, D)

    S = 1 + P
    S_pad = _round_up(S, 8)                          # sublane-aligned sequence length
    # cls-token row + positional embeddings, padded; fused into the encoder's l==0 init.
    init = params['pos_embed'].at[:, :1, :].add(params['cls_token'])
    init = jnp.pad(init, ((0, 0), (0, S_pad - S), (0, 0)))

    blocks = dict(params['blocks'])
    scale = (D // n_heads) ** -0.5                   # fold softmax scale into Q columns
    blocks['wqkv'] = blocks['wqkv'].at[:, :, :D].multiply(scale)
    blocks['bqkv'] = blocks['bqkv'].at[:, :, :D].multiply(scale)

    C = params['head_w'].shape[1]
    Cp = max(128, _round_up(C, 128))                 # lane-dense classifier store
    head_w = jnp.pad(params['head_w'], ((0, 0), (0, Cp - C)))
    head_b = jnp.pad(params['head_b'], ((0, 0), (0, Cp - C)))

    logits = encoder_forward(tokens, init, blocks,
                             params['norm_g'], params['norm_b'],
                             head_w, head_b, n_heads)
    return logits[:, :C]


# --------------------------------- params -----------------------------------

def init_params(key, cfg):
    D = cfg['embed_dim']
    C = cfg['in_chans']
    p = cfg['patch_size']
    P = (cfg['img_size'] // p) ** 2 * (cfg['temporal_size'] // p)
    H = int(D * cfg['mlp_ratio'])
    depth = cfg['depth']
    ks = iter(jax.random.split(key, 4 * depth + 16))

    def w(shape, scale=0.02, dtype=jnp.bfloat16):
        return (scale * jax.random.normal(next(ks), shape)).astype(dtype)

    params = {
        'patch_size': p,
        # Conv3d weight (D, C, p, p, p) stored flattened/transposed as (C*p^3, D), bf16.
        'patch_w': w((C * p * p * p, D)),
        'patch_b': jnp.zeros((1, D), jnp.float32),
        # cls_token / pos_embed are zero-init in the PyTorch module; small deterministic
        # normals here keep the forward pass non-trivial.
        'cls_token': w((1, 1, D), dtype=jnp.float32),
        'pos_embed': w((1, 1 + P, D), dtype=jnp.float32),
        'norm_g': jnp.ones((1, D), jnp.float32),
        'norm_b': jnp.zeros((1, D), jnp.float32),
        'head_w': w((D, cfg['n_classes'])),
        'head_b': jnp.zeros((1, cfg['n_classes']), jnp.float32),
    }
    blocks = {k: [] for k in _WKEYS}
    for _ in range(depth):
        blocks['ln1_g'].append(jnp.ones((1, D), jnp.float32))
        blocks['ln1_b'].append(jnp.zeros((1, D), jnp.float32))
        blocks['wqkv'].append(w((D, 3 * D)))
        blocks['bqkv'].append(jnp.zeros((1, 3 * D), jnp.float32))
        blocks['wproj'].append(w((D, D)))
        blocks['bproj'].append(jnp.zeros((1, D), jnp.float32))
        blocks['ln2_g'].append(jnp.ones((1, D), jnp.float32))
        blocks['ln2_b'].append(jnp.zeros((1, D), jnp.float32))
        blocks['wfc1'].append(w((D, H)))
        blocks['bfc1'].append(jnp.zeros((1, H), jnp.float32))
        blocks['wfc2'].append(w((H, D)))
        blocks['bfc2'].append(jnp.zeros((1, D), jnp.float32))
    # Stack per-layer weights on a leading (depth,) axis for the fused encoder kernel.
    params['blocks'] = {k: jnp.stack(v) for k, v in blocks.items()}
    return params


# ----------------------------------- main ------------------------------------

if __name__ == "__main__":
    cfg = dict(img_size=16, temporal_size=8, patch_size=8, in_chans=3,
               n_classes=20, embed_dim=32, depth=2, n_heads=4, mlp_ratio=4.0)

    key = jax.random.PRNGKey(0)
    params = init_params(key, cfg)

    x = jax.random.normal(
        jax.random.fold_in(key, 123),
        (2, cfg['in_chans'], cfg['temporal_size'], cfg['img_size'], cfg['img_size']),
        dtype=jnp.float32,
    )

    out = vivit_forward(x, params, cfg['n_heads'])
    out = jax.block_until_ready(out)
    assert out.shape == (2, cfg['n_classes']), out.shape
    assert bool(jnp.all(jnp.isfinite(out)))
    print("KERNEL_OK")
</pallas_src>

<mosaic_0001>
module attributes {stable_mosaic.version = 11 : i64} {
  func.func @_patch_embed_kernel(%arg0: i32, %arg1: memref<8x1536xbf16, #tpu.memory_space<vmem>>, %arg2: memref<1536x32xbf16, #tpu.memory_space<vmem>>, %arg3: memref<1x32xf32, #tpu.memory_space<vmem>>, %arg4: memref<8x32xbf16, #tpu.memory_space<vmem>>) attributes {dimension_semantics = [#tpu.dimension_semantics<parallel>], iteration_bounds = array<i64: 1>, scalar_prefetch = 0 : i64, scratch_operands = 0 : i64, tpu.core_type = #tpu.core_type<tc>, window_params = [{transform_indices = @transform_0, window_bounds = array<i64: 8, 1536>}, {pipeline_mode = #tpu.pipeline_mode<synchronous>, transform_indices = @transform_1, window_bounds = array<i64: 1536, 32>}, {pipeline_mode = #tpu.pipeline_mode<synchronous>, transform_indices = @transform_2, window_bounds = array<i64: 1, 32>}, {transform_indices = @transform_3, window_bounds = array<i64: 8, 32>}]} {
    %c0 = arith.constant 0 : index
    %c0_0 = arith.constant 0 : index
    %0 = vector.load %arg1[%c0, %c0_0] : memref<8x1536xbf16, #tpu.memory_space<vmem>>, vector<8x1536xbf16>
    %c0_1 = arith.constant 0 : index
    %c0_2 = arith.constant 0 : index
    %1 = vector.load %arg2[%c0_1, %c0_2] : memref<1536x32xbf16, #tpu.memory_space<vmem>>, vector<1536x32xbf16>
    %cst = arith.constant dense<0.000000e+00> : vector<8x32xf32>
    %2 = tpu.matmul %0, %1, %cst {dimension_numbers = #tpu.dot_dimension_numbers<[1], [0], [0], [1], [0, 0, 1, 1], [], []>} : vector<8x1536xbf16>, vector<1536x32xbf16>, vector<8x32xf32> -> vector<8x32xf32>
    %c0_3 = arith.constant 0 : index
    %c0_4 = arith.constant 0 : index
    %3 = vector.load %arg3[%c0_3, %c0_4] : memref<1x32xf32, #tpu.memory_space<vmem>>, vector<1x32xf32>
    %4 = vector.broadcast %3 : vector<1x32xf32> to vector<8x32xf32>
    %5 = arith.addf %2, %4 : vector<8x32xf32>
    %6 = arith.truncf %5 : vector<8x32xf32> to vector<8x32xbf16>
    %c0_5 = arith.constant 0 : index
    %c0_6 = arith.constant 0 : index
    %7 = vector.load %arg4[%c0_5, %c0_6] : memref<8x32xbf16, #tpu.memory_space<vmem>>, vector<8x32xbf16>
    tpu.vector_store %arg4[%c0_5, %c0_6], %6 {strides = array<i32>} : memref<8x32xbf16, #tpu.memory_space<vmem>>, vector<8x32xbf16>,
    return
  }
  func.func @transform_0(%arg0: i32) -> (i32, i32) {
    %c0_i32 = arith.constant 0 : i32
    %c0_i32_0 = arith.constant 0 : i32
    return %arg0, %c0_i32 : i32, i32
  }
  func.func @transform_1(%arg0: i32) -> (i32, i32) {
    %c0_i32 = arith.constant 0 : i32
    %c0_i32_0 = arith.constant 0 : i32
    %c0_i32_1 = arith.constant 0 : i32
    return %c0_i32, %c0_i32_0 : i32, i32
  }
  func.func @transform_2(%arg0: i32) -> (i32, i32) {
    %c0_i32 = arith.constant 0 : i32
    %c0_i32_0 = arith.constant 0 : i32
    %c0_i32_1 = arith.constant 0 : i32
    return %c0_i32, %c0_i32_0 : i32, i32
  }
  func.func @transform_3(%arg0: i32) -> (i32, i32) {
    %c0_i32 = arith.constant 0 : i32
    %c0_i32_0 = arith.constant 0 : i32
    return %arg0, %c0_i32 : i32, i32
  }
}

</mosaic_0001>

<bundles_post_ra>
// kernel: tpu_custom_call.1
= control target key start
LH: loop header
LB: loop body
LE: loop exit
PB: predicated region body
PF: predicated region fallthrough
CT: control target
= control target key end

     0   :  { %s1801_s0 = inlined_call_operand.vmem [shape: bf16[8,1536], index: 0, kind: input, shape index: {}]   ;;  %s1802_s1 = inlined_call_operand.vmem [shape: bf16[1536,32], index: 1, kind: input, shape index: {}]   ;;  %s1803_s2 = inlined_call_operand.vmem [shape: f32[1,32], index: 2, kind: input, shape index: {}]   ;;  %s1804_s3 = inlined_call_operand.hbm [shape: bf16[8,32], index: 3, kind: output, shape index: {}]  }
   0x1   :  { %v1338_v0 = vld [vmem:[%s1802_s1 + $0x78] sm:$0xff]   ;;  %v1342_v4 = vld [vmem:[%s1802_s1 + $0x70] sm:$0xff]   ;;  %v1346_v8 = vld [vmem:[%s1802_s1 + $0x68] sm:$0xff]  }
   0x2   :  { %v1339_v1 = vld [vmem:[%s1802_s1 + $0xf8] sm:$0xff]   ;;  %1205 = vmatprep.subr.bf16.mxu0 %v1338_v0  ;;  %v1343_v5 = vld [vmem:[%s1802_s1 + $0xf0] sm:$0xff]   ;;  %v1347_v9 = vld [vmem:[%s1802_s1 + $0xe8] sm:$0xff]  }
   0x3   :  { %v1340_v2 = vld [vmem:[%s1802_s1 + $0x38] sm:$0xff]   ;;  %1227 = vmatprep.subr.bf16.mxu1 %v1339_v1  ;;  %v1344_v6 = vld [vmem:[%s1802_s1 + $0x30] sm:$0xff]   ;;  %v1348_v10 = vld [vmem:[%s1802_s1 + $0x28] sm:$0xff]  }
   0x4   :  { %v1341_v3 = vld [vmem:[%s1802_s1 + $0xb8] sm:$0xff]   ;;  %1206 = vmatpush3.bf16.msra.mxu0 %v1340_v2  ;;  %v1345_v7 = vld [vmem:[%s1802_s1 + $0xb0] sm:$0xff]   ;;  %v1349_v11 = vld [vmem:[%s1802_s1 + $0xa8] sm:$0xff]  }
   0x5   :  { %1228 = vmatpush3.bf16.msra.mxu1 %v1341_v3  ;;  %1207 = vmatprep.subr.bf16.mxu0 %v1342_v4  ;;  %v1350_v12 = vld [vmem:[%s1802_s1 + $0x60] sm:$0xff]   ;;  %v1354_v16 = vld [vmem:[%s1802_s1 + $0x58] sm:$0xff]   ;;  %v1358_v20 = vld [vmem:[%s1802_s1 + $0x50] sm:$0xff]  }
   0x6   :  { %1229 = vmatprep.subr.bf16.mxu1 %v1343_v5  ;;  %v1351_v13 = vld [vmem:[%s1802_s1 + $0xe0] sm:$0xff]   ;;  %v1355_v17 = vld [vmem:[%s1802_s1 + $0xd8] sm:$0xff]   ;;  %v1359_v21 = vld [vmem:[%s1802_s1 + $0xd0] sm:$0xff]  }
   0x7   :  { %v1352_v14 = vld [vmem:[%s1802_s1 + $0x20] sm:$0xff]   ;;  %v1356_v18 = vld [vmem:[%s1802_s1 + $0x18] sm:$0xff]   ;;  %v1360_v22 = vld [vmem:[%s1802_s1 + $0x10] sm:$0xff]  }
   0x8   :  { %1208 = vmatpush3.bf16.msra.mxu0 %v1344_v6  ;;  %v1353_v15 = vld [vmem:[%s1802_s1 + $0xa0] sm:$0xff]   ;;  %v1357_v19 = vld [vmem:[%s1802_s1 + $0x98] sm:$0xff]   ;;  %v1361_v23 = vld [vmem:[%s1802_s1 + $0x90] sm:$0xff]  }
   0x9   :  { %1230 = vmatpush3.bf16.msra.mxu1 %v1345_v7  ;;  %1209 = vmatprep.subr.bf16.mxu0 %v1346_v8  ;;  %v1362_v24 = vld [vmem:[%s1802_s1 + $0x48] sm:$0xff]   ;;  %v1366_v28 = vld [vmem:[%s1802_s1 + $0x40] sm:$0xff]   ;;  %v1374_v38 = vld [vmem:[%s1802_s1 + $0x178] sm:$0xff]  }
   0xa   :  { %1231 = vmatprep.subr.bf16.mxu1 %v1347_v9  ;;  %v1363_v25 = vld [vmem:[%s1802_s1 + $0xc8] sm:$0xff]   ;;  %v1367_v29 = vld [vmem:[%s1802_s1 + $0xc0] sm:$0xff]   ;;  %v1375_v39 = vld [vmem:[%s1802_s1 + $0x1f8] sm:$0xff]  }
   0xb   :  { %v1364_v26 = vld [vmem:[%s1802_s1 + $0x8] sm:$0xff]   ;;  %v1368_v30 = vld [vmem:[%s1802_s1] sm:$0xff]   ;;  %v1376_v40 = vld [vmem:[%s1802_s1 + $0x138] sm:$0xff]  }
   0xc   :  { %1210 = vmatpush3.bf16.msra.mxu0 %v1348_v10  ;;  %v1365_v27 = vld [vmem:[%s1802_s1 + $0x88] sm:$0xff]   ;;  %v1369_v31 = vld [vmem:[%s1802_s1 + $0x80] sm:$0xff]   ;;  %v1377_v41 = vld [vmem:[%s1802_s1 + $0x1b8] sm:$0xff]  }
   0xd   :  { %1232 = vmatpush3.bf16.msra.mxu1 %v1349_v11  ;;  %1211 = vmatprep.subr.bf16.mxu0 %v1350_v12  ;;  %v16_v32 = vld [vmem:[%s1801_s0] sm:$0xff]  ;;  %v17_v33 = vld [vmem:[%s1801_s0 + $0x8] sm:$0xff]  ;;  %v1378_v42 = vld [vmem:[%s1802_s1 + $0x170] sm:$0xff]  }
   0xe   :  { %1233 = vmatprep.subr.bf16.mxu1 %v1351_v13  ;;  %v1097_v34 = vcombine.low %v16_v32, %v16_v32  ;;  %v1098_v35 = vcombine.high %v16_v32, %v16_v32  ;;  %v1099_v36 = vcombine.low %v17_v33, %v17_v33  ;;  %v1100_v37 = vcombine.high %v17_v33, %v17_v33  ;;  %v1379_v43 = vld [vmem:[%s1802_s1 + $0x1f0] sm:$0xff]   ;;  %v1382_v46 = vld [vmem:[%s1802_s1 + $0x168] sm:$0xff]   ;;  %v1386_v50 = vld [vmem:[%s1802_s1 + $0x160] sm:$0xff]  }
   0xf   :  { %v1380_v44 = vld [vmem:[%s1802_s1 + $0x130] sm:$0xff]   ;;  %v1383_v47 = vld [vmem:[%s1802_s1 + $0x1e8] sm:$0xff]   ;;  %v1387_v51 = vld [vmem:[%s1802_s1 + $0x1e0] sm:$0xff]  }
  0x10   :  { %1212 = vmatpush3.bf16.msra.mxu0 %v1352_v14  ;;  %871 = vmatprep.mubr.bf16.mxu0 %v1098_v35  ;;  %v1381_v45 = vld [vmem:[%s1802_s1 + $0x1b0] sm:$0xff]   ;;  %v1384_v48 = vld [vmem:[%s1802_s1 + $0x128] sm:$0xff]   ;;  %v1388_v52 = vld [vmem:[%s1802_s1 + $0x120] sm:$0xff]  }
  0x11   :  { %1234 = vmatpush3.bf16.msra.mxu1 %v1353_v15  ;;  %1213 = vmatprep.subr.bf16.mxu0 %v1354_v16  ;;  %v1385_v49 = vld [vmem:[%s1802_s1 + $0x1a8] sm:$0xff]   ;;  %v1389_v53 = vld [vmem:[%s1802_s1 + $0x1a0] sm:$0xff]   ;;  %v1390_v54 = vld [vmem:[%s1802_s1 + $0x158] sm:$0xff]  }
  0x12   :  { %1235 = vmatprep.subr.bf16.mxu1 %v1355_v17  ;;  %911 = vmatprep.mubr.bf16.mxu1 %v1100_v37  ;;  %v1391_v55 = vld [vmem:[%s1802_s1 + $0x1d8] sm:$0xff]   ;;  %v1394_v58 = vld [vmem:[%s1802_s1 + $0x150] sm:$0xff]   ;;  %v1398_v62 = vld [vmem:[%s1802_s1 + $0x148] sm:$0xff]  }
  0x13   :  { %v1392_v56 = vld [vmem:[%s1802_s1 + $0x118] sm:$0xff]   ;;  %v1395_v59 = vld [vmem:[%s1802_s1 + $0x1d0] sm:$0xff]   ;;  %v1399_v63 = vld [vmem:[%s1802_s1 + $0x1c8] sm:$0xff]  }
  0x14   :  { %1214 = vmatpush3.bf16.msra.mxu0 %v1356_v18  ;;  %v1393_v57 = vld [vmem:[%s1802_s1 + $0x198] sm:$0xff]   ;;  %v1396_v60 = vld [vmem:[%s1802_s1 + $0x110] sm:$0xff]   ;;  %v1400_v0 = vld [vmem:[%s1802_s1 + $0x108] sm:$0xff]  }
  0x15   :  { %1236 = vmatpush3.bf16.msra.mxu1 %v1357_v19  ;;  %1215 = vmatprep.subr.bf16.mxu0 %v1358_v20  ;;  %v1397_v61 = vld [vmem:[%s1802_s1 + $0x190] sm:$0xff]   ;;  %v1401_v1 = vld [vmem:[%s1802_s1 + $0x188] sm:$0xff]   ;;  %v1402_v2 = vld [vmem:[%s1802_s1 + $0x140] sm:$0xff]  }
  0x16   :  { %1237 = vmatprep.subr.bf16.mxu1 %v1359_v21  ;;  %v1403_v3 = vld [vmem:[%s1802_s1 + $0x1c0] sm:$0xff]   ;;  %v18_v6 = vld [vmem:[%s1801_s0 + $0x10] sm:$0xff]  ;;  %v19_v9 = vld [vmem:[%s1801_s0 + $0x18] sm:$0xff] }
  0x17   :  { %v1404_v4 = vld [vmem:[%s1802_s1 + $0x100] sm:$0xff]   ;;  %v1101_v7 = vcombine.low %v18_v6, %v18_v6  ;;  %v1102_v8 = vcombine.high %v18_v6, %v18_v6  ;;  %v1103_v10 = vcombine.low %v19_v9, %v19_v9  ;;  %v1104_v11 = vcombine.high %v19_v9, %v19_v9  ;;  %v1410_v12 = vld [vmem:[%s1802_s1 + $0x278] sm:$0xff]   ;;  %v1414_v16 = vld [vmem:[%s1802_s1 + $0x270] sm:$0xff]  }
  0x18   :  { %1216 = vmatpush3.bf16.msra.mxu0 %v1360_v22  ;;  %v1405_v5 = vld [vmem:[%s1802_s1 + $0x180] sm:$0xff]   ;;  %v1411_v13 = vld [vmem:[%s1802_s1 + $0x2f8] sm:$0xff]   ;;  %v1415_v17 = vld [vmem:[%s1802_s1 + $0x2f0] sm:$0xff]  }
  0x19   :  { %1238 = vmatpush3.bf16.msra.mxu1 %v1361_v23  ;;  %1217 = vmatprep.subr.bf16.mxu0 %v1362_v24  ;;  %v1412_v14 = vld [vmem:[%s1802_s1 + $0x238] sm:$0xff]   ;;  %v1416_v18 = vld [vmem:[%s1802_s1 + $0x230] sm:$0xff]   ;;  %v1418_v20 = vld [vmem:[%s1802_s1 + $0x268] sm:$0xff]  }
  0x1a   :  { %1239 = vmatprep.subr.bf16.mxu1 %v1363_v25  ;;  %v1413_v15 = vld [vmem:[%s1802_s1 + $0x2b8] sm:$0xff]   ;;  %v1417_v19 = vld [vmem:[%s1802_s1 + $0x2b0] sm:$0xff]   ;;  %v1419_v21 = vld [vmem:[%s1802_s1 + $0x2e8] sm:$0xff]  }
  0x1b   :  { %v1420_v22 = vld [vmem:[%s1802_s1 + $0x228] sm:$0xff]   ;;  %v1422_v24 = vld [vmem:[%s1802_s1 + $0x260] sm:$0xff]   ;;  %v1430_v32 = vld [vmem:[%s1802_s1 + $0x250] sm:$0xff]  }
  0x1c   :  { %1218 = vmatpush3.bf16.msra.mxu0 %v1364_v26  ;;  %v1421_v23 = vld [vmem:[%s1802_s1 + $0x2a8] sm:$0xff]   ;;  %v1423_v25 = vld [vmem:[%s1802_s1 + $0x2e0] sm:$0xff]   ;;  %v1431_v33 = vld [vmem:[%s1802_s1 + $0x2d0] sm:$0xff]  }
  0x1d   :  { %1240 = vmatpush3.bf16.msra.mxu1 %v1365_v27  ;;  %1219 = vmatprep.subr.bf16.mxu0 %v1366_v28  ;;  %v1424_v26 = vld [vmem:[%s1802_s1 + $0x220] sm:$0xff]   ;;  %v1426_v28 = vld [vmem:[%s1802_s1 + $0x258] sm:$0xff]   ;;  %v1433_v35 = vld [vmem:[%s1802_s1 + $0x290] sm:$0xff]  }
  0x1e   :  { %1241 = vmatprep.subr.bf16.mxu1 %v1367_v29  ;;  %v1425_v27 = vld [vmem:[%s1802_s1 + $0x2a0] sm:$0xff]   ;;  %v1427_v29 = vld [vmem:[%s1802_s1 + $0x2d8] sm:$0xff]   ;;  %v1435_v37 = vld [vmem:[%s1802_s1 + $0x2c8] sm:$0xff]  }
  0x20   :  { %1220 = vmatpush3.bf16.msra.mxu0 %v1368_v30  ;;  %v1428_v30 = vld [vmem:[%s1802_s1 + $0x218] sm:$0xff]  }
  0x21   :  { %1242 = vmatpush3.bf16.msra.mxu1 %v1369_v31  ;;  %1249 = vmatprep.subr.bf16.mxu0 %v1374_v38  ;;  %v1429_v31 = vld [vmem:[%s1802_s1 + $0x298] sm:$0xff]   ;;  %v1436_v38 = vld [vmem:[%s1802_s1 + $0x208] sm:$0xff]  }
  0x22   :  { %1271 = vmatprep.subr.bf16.mxu1 %v1375_v39  ;;  %v1437_v39 = vld [vmem:[%s1802_s1 + $0x288] sm:$0xff]  }
  0x23   :  { %872 = vmatmul.mubr.bf16.vlgmr.msra.gmra.mxu0 %v1097_v34  ;;  %v1432_v34 = vld [vmem:[%s1802_s1 + $0x210] sm:$0xff]  }
  0x24   :  { %912 = vmatmul.mubr.bf16.vlgmr.msra.gmra.mxu1 %v1099_v36  ;;  %1250 = vmatpush3.bf16.msra.mxu0 %v1376_v40  ;;  %v1434_v36 = vld [vmem:[%s1802_s1 + $0x248] sm:$0xff]   ;;  %v1438_v40 = vld [vmem:[%s1802_s1 + $0x240] sm:$0xff]  }
  0x25   :  { %1272 = vmatpush3.bf16.msra.mxu1 %v1377_v41  ;;  %1251 = vmatprep.subr.bf16.mxu0 %v1378_v42  ;;  %v1439_v41 = vld [vmem:[%s1802_s1 + $0x2c0] sm:$0xff]  }
  0x26   :  { %1273 = vmatprep.subr.bf16.mxu1 %v1379_v43  ;;  %951 = vmatprep.mubr.bf16.mxu0 %v1102_v8  ;;  %v1440_v42 = vld [vmem:[%s1802_s1 + $0x200] sm:$0xff]  }
  0x27   :  { %991 = vmatprep.mubr.bf16.mxu1 %v1104_v11  ;;  %v1441_v43 = vld [vmem:[%s1802_s1 + $0x280] sm:$0xff]  }
  0x28   :  { %1252 = vmatpush3.bf16.msra.mxu0 %v1380_v44  ;;  %v20_v44 = vld [vmem:[%s1801_s0 + $0x20] sm:$0xff] }
  0x29   :  { %1274 = vmatpush3.bf16.msra.mxu1 %v1381_v45  ;;  %1253 = vmatprep.subr.bf16.mxu0 %v1382_v46  ;;  %v21_v45 = vld [vmem:[%s1801_s0 + $0x28] sm:$0xff]  ;;  %v1105_v46 = vcombine.low %v20_v44, %v20_v44 }
  0x2a   :  { %1275 = vmatprep.subr.bf16.mxu1 %v1383_v47  ;;  %v1106_v47 = vcombine.high %v20_v44, %v20_v44 }
  0x2c   :  { %1254 = vmatpush3.bf16.msra.mxu0 %v1384_v48  ;;  %v1107_v48 = vcombine.low %v21_v45, %v21_v45 }
  0x2d   :  { %1276 = vmatpush3.bf16.msra.mxu1 %v1385_v49  ;;  %1255 = vmatprep.subr.bf16.mxu0 %v1386_v50  ;;  %v1108_v49 = vcombine.high %v21_v45, %v21_v45 }
  0x2e   :  { %1277 = vmatprep.subr.bf16.mxu1 %v1387_v51 }
  0x30   :  { %1256 = vmatpush3.bf16.msra.mxu0 %v1388_v52 }
  0x31   :  { %1278 = vmatpush3.bf16.msra.mxu1 %v1389_v53  ;;  %1257 = vmatprep.subr.bf16.mxu0 %v1390_v54 }
  0x32   :  { %1279 = vmatprep.subr.bf16.mxu1 %v1391_v55 }
  0x34   :  { %1258 = vmatpush3.bf16.msra.mxu0 %v1392_v56 }
  0x35   :  { %1280 = vmatpush3.bf16.msra.mxu1 %v1393_v57  ;;  %1259 = vmatprep.subr.bf16.mxu0 %v1394_v58 }
  0x36   :  { %1281 = vmatprep.subr.bf16.mxu1 %v1395_v59 }
  0x38   :  { %1260 = vmatpush3.bf16.msra.mxu0 %v1396_v60 }
  0x39   :  { %1282 = vmatpush3.bf16.msra.mxu1 %v1397_v61  ;;  %1261 = vmatprep.subr.bf16.mxu0 %v1398_v62 }
  0x3a   :  { %1283 = vmatprep.subr.bf16.mxu1 %v1399_v63 }
  0x3c   :  { %1262 = vmatpush3.bf16.msra.mxu0 %v1400_v0 }
  0x3d   :  { %1284 = vmatpush3.bf16.msra.mxu1 %v1401_v1  ;;  %1263 = vmatprep.subr.bf16.mxu0 %v1402_v2 }
  0x3e   :  { %1285 = vmatprep.subr.bf16.mxu1 %v1403_v3 }
  0x40   :  { %1264 = vmatpush3.bf16.msra.mxu0 %v1404_v4 }
  0x41   :  { %1286 = vmatpush3.bf16.msra.mxu1 %v1405_v5  ;;  %1293 = vmatprep.subr.bf16.mxu0 %v1410_v12 }
  0x42   :  { %1315 = vmatprep.subr.bf16.mxu1 %v1411_v13 }
  0x43   :  { %952 = vmatmul.mubr.bf16.vlgmr.msra.gmra.mxu0 %v1101_v7 }
  0x44   :  { %992 = vmatmul.mubr.bf16.vlgmr.msra.gmra.mxu1 %v1103_v10  ;;  %1294 = vmatpush3.bf16.msra.mxu0 %v1412_v14 }
  0x45   :  { %1316 = vmatpush3.bf16.msra.mxu1 %v1413_v15  ;;  %1295 = vmatprep.subr.bf16.mxu0 %v1414_v16 }
  0x46   :  { %1317 = vmatprep.subr.bf16.mxu1 %v1415_v17 }
  0x48   :  { %1296 = vmatpush3.bf16.msra.mxu0 %v1416_v18 }
  0x49   :  { %1318 = vmatpush3.bf16.msra.mxu1 %v1417_v19  ;;  %1297 = vmatprep.subr.bf16.mxu0 %v1418_v20 }
  0x4a   :  { %1319 = vmatprep.subr.bf16.mxu1 %v1419_v21 }
  0x4c   :  { %1298 = vmatpush3.bf16.msra.mxu0 %v1420_v22 }
  0x4d   :  { %1320 = vmatpush3.bf16.msra.mxu1 %v1421_v23  ;;  %1299 = vmatprep.subr.bf16.mxu0 %v1422_v24 }
  0x4e   :  { %1321 = vmatprep.subr.bf16.mxu1 %v1423_v25 }
  0x50   :  { %1300 = vmatpush3.bf16.msra.mxu0 %v1424_v26 }
  0x51   :  { %1322 = vmatpush3.bf16.msra.mxu1 %v1425_v27  ;;  %1301 = vmatprep.subr.bf16.mxu0 %v1426_v28 }
  0x52   :  { %1323 = vmatprep.subr.bf16.mxu1 %v1427_v29 }
  0x54   :  { %1302 = vmatpush3.bf16.msra.mxu0 %v1428_v30 }
  0x55   :  { %1324 = vmatpush3.bf16.msra.mxu1 %v1429_v31  ;;  %1303 = vmatprep.subr.bf16.mxu0 %v1430_v32 }
  0x56   :  { %1325 = vmatprep.subr.bf16.mxu1 %v1431_v33 }
  0x58   :  { %1304 = vmatpush3.bf16.msra.mxu0 %v1432_v34 }
  0x59   :  { %1326 = vmatpush3.bf16.msra.mxu1 %v1433_v35  ;;  %1305 = vmatprep.subr.bf16.mxu0 %v1434_v36 }
  0x5a   :  { %1327 = vmatprep.subr.bf16.mxu1 %v1435_v37 }
  0x5c   :  { %1306 = vmatpush3.bf16.msra.mxu0 %v1436_v38 }
  0x5d   :  { %1328 = vmatpush3.bf16.msra.mxu1 %v1437_v39  ;;  %1307 = vmatprep.subr.bf16.mxu0 %v1438_v40 }
  0x5e   :  { %1329 = vmatprep.subr.bf16.mxu1 %v1439_v41 }
  0x60   :  { %1308 = vmatpush3.bf16.msra.mxu0 %v1440_v42 }
  0x61   :  { %8 = vsyncpa [#allocation3], 0  ;;  %1330 = vmatpush3.bf16.msra.mxu1 %v1441_v43  ;;  %1031 = vmatprep.mubr.bf16.mxu0 %v1106_v47  ;;  %v1096_v3 = vld [vmem:[%s1803_s2] ss:$0 sm:$0xff]  ;;  %s1468_s27 = smov [#allocation2]   ;;  %vm1080_vm0 = vcmask 257024  }
  0x62   :  { %1071 = vmatprep.mubr.bf16.mxu1 %v1108_v49  ;;  %s1088_s28 = sshll.u32 %s1468_s27, 4  ;;  %s1089_s28 = int_to_ptr.vmem [resolvable:$true] %s1088_s28 }
  0x63   :  { %1032 = vmatmul.mubr.bf16.vlgmr.msra.gmra.mxu0 %v1105_v46  ;;  %s1446_s2 = scalar_lea.vmem %s1089_s28, 64  ;;  %p1451_p1 = scmp.lt.s32.totalorder %s1089_s28, %s1089_s28 }
  0x64   :  { %1072 = vmatmul.mubr.bf16.vlgmr.msra.gmra.mxu1 %v1107_v48  ;;  %p1447_p0 = scmp.ne.s32.totalorder %s1089_s28, %s1446_s2  ;;  %p1452_p2 = scmp.lt.s32.totalorder %s1446_s2, %s1446_s2 }
  0x66   :  { %p1453_p3 = por %p1452_p2, %p1451_p1 }
  0x68   :  { %p1454_p4 = pnand %p1453_p3, %p1447_p0 }
  0xe3   :  { %v1221_v50 = vpop.f32.mrf.mxu0 }
  0xe4   :  { %v1243_v51 = vpop.f32.mrf.mxu1 }
  0xe5   :  { %v1222_v52 = vpop.f32.mrf.mxu0 }
  0xe6   :  { %v1244_v53 = vpop.f32.mrf.mxu1  ;;  %v1223_v2 = vadd.f32 %v1222_v52, %v1221_v50 }
  0xe7   :  { %v1224_v54 = vpop.f32.mrf.mxu0  ;;  %v1245_v5 = vadd.f32 %v1244_v53, %v1243_v51 }
  0xe8   :  { %v1246_v55 = vpop.f32.mrf.mxu1  ;;  %v874_v4 = vadd.f32 %v1223_v2, %v1096_v3 }
  0xe9   :  { %v1225_v56 = vpop.f32.mrf.mxu0 }
  0xea   :  { %v1247_v57 = vpop.f32.mrf.mxu1  ;;  %v914_v7 = vadd.f32 %v1245_v5, %v874_v4 }
 0x103   :  { %v1265_v58 = vpop.f32.mrf.mxu0 }
 0x104   :  { %v1287_v59 = vpop.f32.mrf.mxu1 }
 0x105   :  { %v1266_v60 = vpop.f32.mrf.mxu0 }
 0x106   :  { %v1288_v61 = vpop.f32.mrf.mxu1  ;;  %v1267_v6 = vadd.f32 %v1266_v60, %v1265_v58 }
 0x107   :  { %v1268_v62 = vpop.f32.mrf.mxu0  ;;  %v1289_v9 = vadd.f32 %v1288_v61, %v1287_v59 }
 0x108   :  { %v1290_v63 = vpop.f32.mrf.mxu1  ;;  %v954_v8 = vadd.f32 %v1267_v6, %v914_v7 }
 0x109   :  { %v1269_v0 = vpop.f32.mrf.mxu0 }
 0x10a   :  { %v1291_v1 = vpop.f32.mrf.mxu1  ;;  %v994_v13 = vadd.f32 %v1289_v9, %v954_v8 }
 0x123   :  { %v1309_v10 = vpop.f32.mrf.mxu0 }
 0x124   :  { %v1331_v11 = vpop.f32.mrf.mxu1 }
 0x125   :  { %v1310_v12 = vpop.f32.mrf.mxu0 }
 0x126   :  { %v1311_v14 = vadd.f32 %v1310_v12, %v1309_v10  ;;  %v1332_v15 = vpop.f32.mrf.mxu1 }
 0x127   :  { %v1312_v16 = vpop.f32.mrf.mxu0  ;;  %v1333_v18 = vadd.f32 %v1332_v15, %v1331_v11 }
 0x128   :  { %v1034_v17 = vadd.f32 %v1311_v14, %v994_v13  ;;  %v1334_v19 = vpop.f32.mrf.mxu1 }
 0x129   :  { %v1313_v20 = vpop.f32.mrf.mxu0 }
 0x12a   :  { %v1074_v21 = vadd.f32 %v1333_v18, %v1034_v17  ;;  %v1335_v22 = vpop.f32.mrf.mxu1 }
 0x12c   :  { %v1079_v23 = vpack.c.bf16 %v1074_v21, %v1074_v21 }
 0x12e   :  { %1081 = vst.msk [vmem:[#allocation2] sm:$0xf] %vm1080_vm0, %v1079_v23 }
 0x12f   :  { %1457 = shalt.err (!%p1454_p4)
}
 0x130   :  { %1091 = dma.vmem_to_hbm [thread:$0]  %s1089_s28, 64, %s1804_s3, [#allocation3]  }
 0x131   :  { %1466 = dma.done.wait [#allocation3], 64  }
 0x132   :  { %1467 = vsyncadd [#allocation3], 4294967232 }
 0x133   :  { %1095 = vsyncpa [#allocation3], 1 }

</bundles_post_ra>
